<compile_context>
chip_gen: v7x
topology: tpu7x:2x2x1
jax: 0.10.0
libtpu: 0.0.40
codegen_flags: <defaults>
</compile_context>

<pallas_src>
import functools

import jax
import jax.numpy as jnp
from jax.experimental import pallas as pl
from jax.experimental.pallas import tpu as pltpu


def _round_up(x, m):
    return ((x + m - 1) // m) * m


_HAS_BUFFERED = hasattr(pl, "Buffered")


def _const_spec(shape):
    """BlockSpec for a grid-invariant (weight/bias) operand.

    Constant index_map => the tile is fetched once; pl.Buffered(1) drops the
    useless second pipeline buffer (weights never change across grid steps).
    """
    index_map = lambda i: (0,) * len(shape)
    if _HAS_BUFFERED:
        try:
            return pl.BlockSpec(shape, index_map, pipeline_mode=pl.Buffered(1))
        except Exception:
            pass
    return pl.BlockSpec(shape, index_map)


@functools.lru_cache(maxsize=1)
def _vmem_budget_bytes():
    """Per-core VMEM the kernel may request: capacity - 8 MiB headroom, <= 100 MiB."""
    try:
        cap = int(getattr(pltpu.get_tpu_info(), "vmem_capacity_bytes", 64 << 20))
    except Exception:
        cap = 64 << 20  # conservative fallback: v7x per-TensorCore VMEM
    return max(min(cap - (8 << 20), 100 << 20), 16 << 20)


def fuse_layer_kernel(orig_ref, x1_ref, x2_ref,
                      w12a_ref, w1b_ref, w1p_ref, b1_ref,
                      w2b_ref, w2p_ref, b2_ref,
                      w3a_ref, w3b_ref, b3_ref,
                      out_ref):
    H = out_ref.shape[-1]
    cdt = w12a_ref.dtype  # MXU dtype (bf16 by default)

    # Elementwise math stays in f32 (v5e VPU/EUP have no bf16 path).
    orig = orig_ref[...].astype(jnp.float32)
    x1 = x1_ref[...].astype(jnp.float32)
    x2 = x2_ref[...].astype(jnp.float32)

    orig_c = orig.astype(cdt)
    x1_c = x1.astype(cdt)
    x2_c = x2.astype(cdt)
    p1_c = (orig * x1).astype(cdt)
    p2_c = (orig * x2).astype(cdt)

    # Shared-`orig` matmul for linear1/linear2 fused into one MXU launch with a
    # 2H-wide N dimension (fills the 256-wide MXU on v6e/v7x).
    r12 = jnp.dot(orig_c, w12a_ref[...], preferred_element_type=jnp.float32)

    # linear1(cat[o, x1, o-x1, o*x1]); the (o-x1) block is folded into the o/x1
    # weight slices in the wrapper.  Sequential accumulation keeps the sums on
    # the MXU result path (MRB in-place accumulate on v7x).
    h1 = r12[:, :H]
    h1 = h1 + jnp.dot(x1_c, w1b_ref[...], preferred_element_type=jnp.float32)
    h1 = h1 + jnp.dot(p1_c, w1p_ref[...], preferred_element_type=jnp.float32)
    out1 = jnp.maximum(h1 + b1_ref[...], 0.0)

    # linear2(cat[o, x2, o-x2, o*x2]) — same structure.
    h2 = r12[:, H:]
    h2 = h2 + jnp.dot(x2_c, w2b_ref[...], preferred_element_type=jnp.float32)
    h2 = h2 + jnp.dot(p2_c, w2p_ref[...], preferred_element_type=jnp.float32)
    out2 = jnp.maximum(h2 + b2_ref[...], 0.0)

    # linear3(cat[out1, out2]) -> sigmoid gate.
    h3 = jnp.dot(out1.astype(cdt), w3a_ref[...], preferred_element_type=jnp.float32)
    h3 = h3 + jnp.dot(out2.astype(cdt), w3b_ref[...], preferred_element_type=jnp.float32)
    fuse_prob = jax.nn.sigmoid(h3 + b3_ref[...])

    # Blend written as x2 + p*(x1 - x2): one fewer full-tile VPU multiply.
    out_ref[...] = (x2 + fuse_prob * (x1 - x2)).astype(out_ref.dtype)


@functools.partial(jax.jit, static_argnames=("tm", "matmul_dtype"))
def fuse_layer(orig, input1, input2, params, *, tm=None, matmul_dtype=jnp.bfloat16):
    """orig/input1/input2: [B, S, H] (f32 or bf16); params: dict of weights/biases.

    tm: row tile (rows of B*S per grid step); None -> auto (512 on v5e/v6e, 256 on v7x).
    matmul_dtype: dtype fed to the MXU (bf16 default; f32 for bit-accuracy).
    Output dtype matches the input activation dtype.
    """
    B, S, H = orig.shape
    M = B * S
    # TODO(synk): for best lane/MXU utilization production H should be a multiple
    # of 128 (>=256 on v6e/v7x); smaller H (like the demo's 32) runs correctly but
    # with masked partial vregs and an underfilled MXU.

    vmem_budget = _vmem_budget_bytes()
    if tm is None:
        tm = 512 if vmem_budget >= (90 << 20) else 256  # 128-MiB chips vs v7x

    # Row tile: multiple of 8 sublanes, never larger than the (8-padded) problem.
    tm_eff = min(_round_up(tm, 8), _round_up(M, 8))
    # Keep >= 2 grid steps so ("parallel",) can shard rows across v7x's 2 TensorCores.
    if M > 8:
        tm_eff = min(tm_eff, _round_up(pl.cdiv(M, 2), 8))

    act_itemsize = jnp.dtype(orig.dtype).itemsize
    w_itemsize = jnp.dtype(matmul_dtype).itemsize
    wbuf = 1 if _HAS_BUFFERED else 2  # single-buffered weights when Buffered(1) is available

    def vmem_estimate(rows):
        act = 4 * 2 * rows * H * act_itemsize            # 3 inputs + 1 output, double-buffered
        wgt = wbuf * (8 * H * H * w_itemsize + 3 * H * 4)  # resident weights + biases
        tmp = 12 * rows * H * 4                           # f32 intermediates / headroom
        return act + wgt + tmp

    while vmem_estimate(tm_eff) > vmem_budget and tm_eff > 8:
        tm_eff = max(8, _round_up(tm_eff // 2, 8))
    # TODO(synk): when the weights alone exceed the VMEM budget (bf16: 8*H^2 bytes;
    # roughly H >= 1800 on v7x, H >= 3600 on v5e/v6e), add an "arbitrary" K grid axis
    # that streams (Hk, H) weight slabs into a f32 accumulator instead of shrinking tm.

    grid = pl.cdiv(M, tm_eff)
    vmem_limit = min(vmem_budget,
                     max(int(1.25 * vmem_estimate(tm_eff)) + (2 << 20), 16 << 20))

    # Row-major [M, H] slabs; no padding — Pallas handles the partial last tile.
    orig2 = orig.reshape(M, H)
    x1_2 = input1.reshape(M, H)
    x2_2 = input2.reshape(M, H)

    w1, b1 = params["w1"], params["b1"]   # (4H, H), (1, H)
    w2, b2 = params["w2"], params["b2"]   # (4H, H), (1, H)
    w3, b3 = params["w3"], params["b3"]   # (2H, H), (1, H)

    # Algebraic fold: cat[o, x, o-x, o*x] @ W == o@(A+C) + x@(B-C) + (o*x)@D
    # with A=W[:H], B=W[H:2H], C=W[2H:3H], D=W[3H:].
    def fold(w):
        a, b_, c, d = w[:H], w[H:2 * H], w[2 * H:3 * H], w[3 * H:]
        return a + c, b_ - c, d

    w1a, w1b, w1p = fold(w1)
    w2a, w2b, w2p = fold(w2)
    # Shared-`orig` slices of linear1/linear2 concatenated once -> one fused matmul.
    w12a = jnp.concatenate([w1a, w2a], axis=1).astype(matmul_dtype)   # (H, 2H)
    w1b = w1b.astype(matmul_dtype)
    w1p = w1p.astype(matmul_dtype)
    w2b = w2b.astype(matmul_dtype)
    w2p = w2p.astype(matmul_dtype)
    w3a = w3[:H].astype(matmul_dtype)
    w3b = w3[H:].astype(matmul_dtype)
    b1f = b1.astype(jnp.float32)
    b2f = b2.astype(jnp.float32)
    b3f = b3.astype(jnp.float32)

    row_spec = pl.BlockSpec((tm_eff, H), lambda i: (i, 0))
    w12spec = _const_spec((H, 2 * H))
    wspec = _const_spec((H, H))
    bspec = _const_spec((1, H))

    cost = pl.CostEstimate(
        flops=2 * M * H * (3 * H + 3 * H + 2 * H),
        transcendentals=M * H,                     # sigmoid
        bytes_accessed=4 * M * H * act_itemsize + (8 * H * H + 3 * H) * w_itemsize,
    )

    out = pl.pallas_call(
        fuse_layer_kernel,
        out_shape=jax.ShapeDtypeStruct((M, H), orig.dtype),
        grid_spec=pltpu.PrefetchScalarGridSpec(
            num_scalar_prefetch=0,
            grid=(grid,),
            in_specs=[
                row_spec, row_spec, row_spec,        # orig, input1, input2
                w12spec, wspec, wspec, bspec,        # fused orig-slices, linear1 rest, b1
                wspec, wspec, bspec,                 # linear2 rest, b2
                wspec, wspec, bspec,                 # linear3 slices, b3
            ],
            out_specs=row_spec,
        ),
        compiler_params=pltpu.CompilerParams(
            dimension_semantics=("parallel",),
            vmem_limit_bytes=vmem_limit,
        ),
        cost_estimate=cost,
    )(orig2, x1_2, x2_2,
      w12a, w1b, w1p, b1f,
      w2b, w2p, b2f,
      w3a, w3b, b3f)

    return out.reshape(B, S, H)


def make_params(key, hidden):
    """Deterministic synthetic weights (matches nn.Linear shapes, transposed)."""
    k1, k2, k3, k4, k5, k6 = jax.random.split(key, 6)
    s = lambda fan_in: 1.0 / jnp.sqrt(fan_in)
    return {
        "w1": jax.random.uniform(k1, (4 * hidden, hidden), jnp.float32,
                                 -s(4 * hidden), s(4 * hidden)),
        "b1": jax.random.uniform(k2, (1, hidden), jnp.float32,
                                 -s(4 * hidden), s(4 * hidden)),
        "w2": jax.random.uniform(k3, (4 * hidden, hidden), jnp.float32,
                                 -s(4 * hidden), s(4 * hidden)),
        "b2": jax.random.uniform(k4, (1, hidden), jnp.float32,
                                 -s(4 * hidden), s(4 * hidden)),
        "w3": jax.random.uniform(k5, (2 * hidden, hidden), jnp.float32,
                                 -s(2 * hidden), s(2 * hidden)),
        "b3": jax.random.uniform(k6, (1, hidden), jnp.float32,
                                 -s(2 * hidden), s(2 * hidden)),
    }


def fuse_layer_ref(orig, x1, x2, p):
    """Pure-JAX reference of the PyTorch forward (unfolded weights)."""
    out1 = jax.nn.relu(
        jnp.concatenate([orig, x1, orig - x1, orig * x1], -1) @ p["w1"] + p["b1"][0])
    out2 = jax.nn.relu(
        jnp.concatenate([orig, x2, orig - x2, orig * x2], -1) @ p["w2"] + p["b2"][0])
    prob = jax.nn.sigmoid(
        jnp.concatenate([out1, out2], -1) @ p["w3"] + p["b3"][0])
    return prob * x1 + (1.0 - prob) * x2


if __name__ == "__main__":
    B, S, H = 2, 8, 32  # batch=2, seq=8, hidden=32
    key = jax.random.PRNGKey(0)
    k_o, k_1, k_2, k_p = jax.random.split(key, 4)

    orig = jax.random.normal(k_o, (B, S, H), jnp.float32)
    input1 = jax.random.normal(k_1, (B, S, H), jnp.float32)
    input2 = jax.random.normal(k_2, (B, S, H), jnp.float32)
    params = make_params(k_p, H)

    ref = fuse_layer_ref(orig, input1, input2, params)

    # 1) f32 matmul path: tight check of the folded/fused kernel math.
    out_f32 = fuse_layer(orig, input1, input2, params, matmul_dtype=jnp.float32)
    jax.block_until_ready(out_f32)
    assert out_f32.shape == (B, S, H)
    assert jnp.allclose(out_f32, ref, atol=1e-4, rtol=1e-4), "f32 mismatch vs reference"

    # 2) default mixed-precision path (bf16 MXU, f32 accumulate / epilogue).
    out_bf16 = fuse_layer(orig, input1, input2, params)
    jax.block_until_ready(out_bf16)
    assert jnp.allclose(out_bf16, ref, atol=3e-2, rtol=3e-2), "bf16 mismatch vs reference"

    # 3) ragged M (B*S not divisible by the row tile): exercises the partial
    #    last-tile path (no wrapper pad / slice).
    B2, S2 = 3, 5
    o2 = jax.random.normal(k_o, (B2, S2, H), jnp.float32)
    a2 = jax.random.normal(k_1, (B2, S2, H), jnp.float32)
    c2 = jax.random.normal(k_2, (B2, S2, H), jnp.float32)
    out_r = fuse_layer(o2, a2, c2, params, matmul_dtype=jnp.float32)
    jax.block_until_ready(out_r)
    assert jnp.allclose(out_r, fuse_layer_ref(o2, a2, c2, params),
                        atol=1e-4, rtol=1e-4), "ragged-M mismatch vs reference"

    # 4) bf16 activations in / bf16 out (halves activation HBM traffic when the
    #    surrounding model already runs in bf16).
    ob, ab, cb = (t.astype(jnp.bfloat16) for t in (orig, input1, input2))
    out_b = fuse_layer(ob, ab, cb, params)
    jax.block_until_ready(out_b)
    assert out_b.dtype == jnp.bfloat16
    ref_b = fuse_layer_ref(ob.astype(jnp.float32), ab.astype(jnp.float32),
                           cb.astype(jnp.float32), params)
    assert jnp.allclose(out_b.astype(jnp.float32), ref_b,
                        atol=1e-1, rtol=1e-1), "bf16-activation mismatch vs reference"

    print("KERNEL_OK")
</pallas_src>

<mosaic_0001>
module attributes {stable_mosaic.version = 11 : i64} {
  func.func @fuse_layer_kernel(%arg0: i32, %arg1: memref<8x32xf32, #tpu.memory_space<vmem>>, %arg2: memref<8x32xf32, #tpu.memory_space<vmem>>, %arg3: memref<8x32xf32, #tpu.memory_space<vmem>>, %arg4: memref<32x64xf32, #tpu.memory_space<vmem>>, %arg5: memref<32x32xf32, #tpu.memory_space<vmem>>, %arg6: memref<32x32xf32, #tpu.memory_space<vmem>>, %arg7: memref<1x32xf32, #tpu.memory_space<vmem>>, %arg8: memref<32x32xf32, #tpu.memory_space<vmem>>, %arg9: memref<32x32xf32, #tpu.memory_space<vmem>>, %arg10: memref<1x32xf32, #tpu.memory_space<vmem>>, %arg11: memref<32x32xf32, #tpu.memory_space<vmem>>, %arg12: memref<32x32xf32, #tpu.memory_space<vmem>>, %arg13: memref<1x32xf32, #tpu.memory_space<vmem>>, %arg14: memref<8x32xf32, #tpu.memory_space<vmem>>) attributes {dimension_semantics = [#tpu.dimension_semantics<parallel>], iteration_bounds = array<i64: 2>, scalar_prefetch = 0 : i64, scratch_operands = 0 : i64, tpu.core_type = #tpu.core_type<tc>, window_params = [{transform_indices = @transform_0, window_bounds = array<i64: 8, 32>}, {transform_indices = @transform_1, window_bounds = array<i64: 8, 32>}, {transform_indices = @transform_2, window_bounds = array<i64: 8, 32>}, {pipeline_mode = #tpu.pipeline_mode<synchronous>, transform_indices = @transform_3, window_bounds = array<i64: 32, 64>}, {pipeline_mode = #tpu.pipeline_mode<synchronous>, transform_indices = @transform_4, window_bounds = array<i64: 32, 32>}, {pipeline_mode = #tpu.pipeline_mode<synchronous>, transform_indices = @transform_5, window_bounds = array<i64: 32, 32>}, {pipeline_mode = #tpu.pipeline_mode<synchronous>, transform_indices = @transform_6, window_bounds = array<i64: 1, 32>}, {pipeline_mode = #tpu.pipeline_mode<synchronous>, transform_indices = @transform_7, window_bounds = array<i64: 32, 32>}, {pipeline_mode = #tpu.pipeline_mode<synchronous>, transform_indices = @transform_8, window_bounds = array<i64: 32, 32>}, {pipeline_mode = #tpu.pipeline_mode<synchronous>, transform_indices = @transform_9, window_bounds = array<i64: 1, 32>}, {pipeline_mode = #tpu.pipeline_mode<synchronous>, transform_indices = @transform_10, window_bounds = array<i64: 32, 32>}, {pipeline_mode = #tpu.pipeline_mode<synchronous>, transform_indices = @transform_11, window_bounds = array<i64: 32, 32>}, {pipeline_mode = #tpu.pipeline_mode<synchronous>, transform_indices = @transform_12, window_bounds = array<i64: 1, 32>}, {transform_indices = @transform_13, window_bounds = array<i64: 8, 32>}]} {
    %c0 = arith.constant 0 : index
    %c0_0 = arith.constant 0 : index
    %0 = vector.load %arg1[%c0, %c0_0] : memref<8x32xf32, #tpu.memory_space<vmem>>, vector<8x32xf32>
    %c0_1 = arith.constant 0 : index
    %c0_2 = arith.constant 0 : index
    %1 = vector.load %arg2[%c0_1, %c0_2] : memref<8x32xf32, #tpu.memory_space<vmem>>, vector<8x32xf32>
    %c0_3 = arith.constant 0 : index
    %c0_4 = arith.constant 0 : index
    %2 = vector.load %arg3[%c0_3, %c0_4] : memref<8x32xf32, #tpu.memory_space<vmem>>, vector<8x32xf32>
    %3 = arith.mulf %0, %1 : vector<8x32xf32>
    %4 = arith.mulf %0, %2 : vector<8x32xf32>
    %c0_5 = arith.constant 0 : index
    %c0_6 = arith.constant 0 : index
    %5 = vector.load %arg4[%c0_5, %c0_6] : memref<32x64xf32, #tpu.memory_space<vmem>>, vector<32x64xf32>
    %cst = arith.constant dense<0.000000e+00> : vector<8x64xf32>
    %6 = tpu.matmul %0, %5, %cst {dimension_numbers = #tpu.dot_dimension_numbers<[1], [0], [0], [1], [0, 0, 1, 1], [], []>} : vector<8x32xf32>, vector<32x64xf32>, vector<8x64xf32> -> vector<8x64xf32>
    %7 = vector.extract_strided_slice %6 {offsets = [0, 0], sizes = [8, 32], strides = [1, 1]} : vector<8x64xf32> to vector<8x32xf32>
    %c0_7 = arith.constant 0 : index
    %c0_8 = arith.constant 0 : index
    %8 = vector.load %arg5[%c0_7, %c0_8] : memref<32x32xf32, #tpu.memory_space<vmem>>, vector<32x32xf32>
    %cst_9 = arith.constant dense<0.000000e+00> : vector<8x32xf32>
    %9 = tpu.matmul %1, %8, %cst_9 {dimension_numbers = #tpu.dot_dimension_numbers<[1], [0], [0], [1], [0, 0, 1, 1], [], []>} : vector<8x32xf32>, vector<32x32xf32>, vector<8x32xf32> -> vector<8x32xf32>
    %10 = arith.addf %7, %9 : vector<8x32xf32>
    %c0_10 = arith.constant 0 : index
    %c0_11 = arith.constant 0 : index
    %11 = vector.load %arg6[%c0_10, %c0_11] : memref<32x32xf32, #tpu.memory_space<vmem>>, vector<32x32xf32>
    %cst_12 = arith.constant dense<0.000000e+00> : vector<8x32xf32>
    %12 = tpu.matmul %3, %11, %cst_12 {dimension_numbers = #tpu.dot_dimension_numbers<[1], [0], [0], [1], [0, 0, 1, 1], [], []>} : vector<8x32xf32>, vector<32x32xf32>, vector<8x32xf32> -> vector<8x32xf32>
    %13 = arith.addf %10, %12 : vector<8x32xf32>
    %c0_13 = arith.constant 0 : index
    %c0_14 = arith.constant 0 : index
    %14 = vector.load %arg7[%c0_13, %c0_14] : memref<1x32xf32, #tpu.memory_space<vmem>>, vector<1x32xf32>
    %15 = vector.broadcast %14 : vector<1x32xf32> to vector<8x32xf32>
    %16 = arith.addf %13, %15 : vector<8x32xf32>
    %cst_15 = arith.constant 0.000000e+00 : f32
    %17 = vector.broadcast %cst_15 : f32 to vector<8x32xf32>
    %18 = arith.maximumf %16, %17 : vector<8x32xf32>
    %19 = vector.extract_strided_slice %6 {offsets = [0, 32], sizes = [8, 32], strides = [1, 1]} : vector<8x64xf32> to vector<8x32xf32>
    %c0_16 = arith.constant 0 : index
    %c0_17 = arith.constant 0 : index
    %20 = vector.load %arg8[%c0_16, %c0_17] : memref<32x32xf32, #tpu.memory_space<vmem>>, vector<32x32xf32>
    %cst_18 = arith.constant dense<0.000000e+00> : vector<8x32xf32>
    %21 = tpu.matmul %2, %20, %cst_18 {dimension_numbers = #tpu.dot_dimension_numbers<[1], [0], [0], [1], [0, 0, 1, 1], [], []>} : vector<8x32xf32>, vector<32x32xf32>, vector<8x32xf32> -> vector<8x32xf32>
    %22 = arith.addf %19, %21 : vector<8x32xf32>
    %c0_19 = arith.constant 0 : index
    %c0_20 = arith.constant 0 : index
    %23 = vector.load %arg9[%c0_19, %c0_20] : memref<32x32xf32, #tpu.memory_space<vmem>>, vector<32x32xf32>
    %cst_21 = arith.constant dense<0.000000e+00> : vector<8x32xf32>
    %24 = tpu.matmul %4, %23, %cst_21 {dimension_numbers = #tpu.dot_dimension_numbers<[1], [0], [0], [1], [0, 0, 1, 1], [], []>} : vector<8x32xf32>, vector<32x32xf32>, vector<8x32xf32> -> vector<8x32xf32>
    %25 = arith.addf %22, %24 : vector<8x32xf32>
    %c0_22 = arith.constant 0 : index
    %c0_23 = arith.constant 0 : index
    %26 = vector.load %arg10[%c0_22, %c0_23] : memref<1x32xf32, #tpu.memory_space<vmem>>, vector<1x32xf32>
    %27 = vector.broadcast %26 : vector<1x32xf32> to vector<8x32xf32>
    %28 = arith.addf %25, %27 : vector<8x32xf32>
    %cst_24 = arith.constant 0.000000e+00 : f32
    %29 = vector.broadcast %cst_24 : f32 to vector<8x32xf32>
    %30 = arith.maximumf %28, %29 : vector<8x32xf32>
    %c0_25 = arith.constant 0 : index
    %c0_26 = arith.constant 0 : index
    %31 = vector.load %arg11[%c0_25, %c0_26] : memref<32x32xf32, #tpu.memory_space<vmem>>, vector<32x32xf32>
    %cst_27 = arith.constant dense<0.000000e+00> : vector<8x32xf32>
    %32 = tpu.matmul %18, %31, %cst_27 {dimension_numbers = #tpu.dot_dimension_numbers<[1], [0], [0], [1], [0, 0, 1, 1], [], []>} : vector<8x32xf32>, vector<32x32xf32>, vector<8x32xf32> -> vector<8x32xf32>
    %c0_28 = arith.constant 0 : index
    %c0_29 = arith.constant 0 : index
    %33 = vector.load %arg12[%c0_28, %c0_29] : memref<32x32xf32, #tpu.memory_space<vmem>>, vector<32x32xf32>
    %cst_30 = arith.constant dense<0.000000e+00> : vector<8x32xf32>
    %34 = tpu.matmul %30, %33, %cst_30 {dimension_numbers = #tpu.dot_dimension_numbers<[1], [0], [0], [1], [0, 0, 1, 1], [], []>} : vector<8x32xf32>, vector<32x32xf32>, vector<8x32xf32> -> vector<8x32xf32>
    %35 = arith.addf %32, %34 : vector<8x32xf32>
    %c0_31 = arith.constant 0 : index
    %c0_32 = arith.constant 0 : index
    %36 = vector.load %arg13[%c0_31, %c0_32] : memref<1x32xf32, #tpu.memory_space<vmem>>, vector<1x32xf32>
    %37 = vector.broadcast %36 : vector<1x32xf32> to vector<8x32xf32>
    %38 = arith.addf %35, %37 : vector<8x32xf32>
    %39 = arith.negf %38 : vector<8x32xf32>
    %40 = math.exp %39 : vector<8x32xf32>
    %cst_33 = arith.constant 1.000000e+00 : f32
    %41 = vector.broadcast %cst_33 : f32 to vector<8x32xf32>
    %42 = arith.addf %41, %40 : vector<8x32xf32>
    %43 = arith.divf %41, %42 : vector<8x32xf32>
    %44 = arith.subf %1, %2 : vector<8x32xf32>
    %45 = arith.mulf %43, %44 : vector<8x32xf32>
    %46 = arith.addf %2, %45 : vector<8x32xf32>
    %c0_34 = arith.constant 0 : index
    %c0_35 = arith.constant 0 : index
    %47 = vector.load %arg14[%c0_34, %c0_35] : memref<8x32xf32, #tpu.memory_space<vmem>>, vector<8x32xf32>
    tpu.vector_store %arg14[%c0_34, %c0_35], %46 {strides = array<i32>} : memref<8x32xf32, #tpu.memory_space<vmem>>, vector<8x32xf32>,
    return
  }
  func.func @transform_0(%arg0: i32) -> (i32, i32) {
    %c0_i32 = arith.constant 0 : i32
    %c0_i32_0 = arith.constant 0 : i32
    return %arg0, %c0_i32 : i32, i32
  }
  func.func @transform_1(%arg0: i32) -> (i32, i32) {
    %c0_i32 = arith.constant 0 : i32
    %c0_i32_0 = arith.constant 0 : i32
    return %arg0, %c0_i32 : i32, i32
  }
  func.func @transform_2(%arg0: i32) -> (i32, i32) {
    %c0_i32 = arith.constant 0 : i32
    %c0_i32_0 = arith.constant 0 : i32
    return %arg0, %c0_i32 : i32, i32
  }
  func.func @transform_3(%arg0: i32) -> (i32, i32) {
    %c0_i32 = arith.constant 0 : i32
    %c0_i32_0 = arith.constant 0 : i32
    %c0_i32_1 = arith.constant 0 : i32
    return %c0_i32, %c0_i32_0 : i32, i32
  }
  func.func @transform_4(%arg0: i32) -> (i32, i32) {
    %c0_i32 = arith.constant 0 : i32
    %c0_i32_0 = arith.constant 0 : i32
    %c0_i32_1 = arith.constant 0 : i32
    return %c0_i32, %c0_i32_0 : i32, i32
  }
  func.func @transform_5(%arg0: i32) -> (i32, i32) {
    %c0_i32 = arith.constant 0 : i32
    %c0_i32_0 = arith.constant 0 : i32
    %c0_i32_1 = arith.constant 0 : i32
    return %c0_i32, %c0_i32_0 : i32, i32
  }
  func.func @transform_6(%arg0: i32) -> (i32, i32) {
    %c0_i32 = arith.constant 0 : i32
    %c0_i32_0 = arith.constant 0 : i32
    %c0_i32_1 = arith.constant 0 : i32
    return %c0_i32, %c0_i32_0 : i32, i32
  }
  func.func @transform_7(%arg0: i32) -> (i32, i32) {
    %c0_i32 = arith.constant 0 : i32
    %c0_i32_0 = arith.constant 0 : i32
    %c0_i32_1 = arith.constant 0 : i32
    return %c0_i32, %c0_i32_0 : i32, i32
  }
  func.func @transform_8(%arg0: i32) -> (i32, i32) {
    %c0_i32 = arith.constant 0 : i32
    %c0_i32_0 = arith.constant 0 : i32
    %c0_i32_1 = arith.constant 0 : i32
    return %c0_i32, %c0_i32_0 : i32, i32
  }
  func.func @transform_9(%arg0: i32) -> (i32, i32) {
    %c0_i32 = arith.constant 0 : i32
    %c0_i32_0 = arith.constant 0 : i32
    %c0_i32_1 = arith.constant 0 : i32
    return %c0_i32, %c0_i32_0 : i32, i32
  }
  func.func @transform_10(%arg0: i32) -> (i32, i32) {
    %c0_i32 = arith.constant 0 : i32
    %c0_i32_0 = arith.constant 0 : i32
    %c0_i32_1 = arith.constant 0 : i32
    return %c0_i32, %c0_i32_0 : i32, i32
  }
  func.func @transform_11(%arg0: i32) -> (i32, i32) {
    %c0_i32 = arith.constant 0 : i32
    %c0_i32_0 = arith.constant 0 : i32
    %c0_i32_1 = arith.constant 0 : i32
    return %c0_i32, %c0_i32_0 : i32, i32
  }
  func.func @transform_12(%arg0: i32) -> (i32, i32) {
    %c0_i32 = arith.constant 0 : i32
    %c0_i32_0 = arith.constant 0 : i32
    %c0_i32_1 = arith.constant 0 : i32
    return %c0_i32, %c0_i32_0 : i32, i32
  }
  func.func @transform_13(%arg0: i32) -> (i32, i32) {
    %c0_i32 = arith.constant 0 : i32
    %c0_i32_0 = arith.constant 0 : i32
    return %arg0, %c0_i32 : i32, i32
  }
}

</mosaic_0001>

<bundles_post_ra>
// kernel: fuse_layer.1
= control target key start
LH: loop header
LB: loop body
LE: loop exit
PB: predicated region body
PF: predicated region fallthrough
CT: control target
= control target key end

     0   :  { %s1780_s0 = inlined_call_operand.vmem [shape: f32[16,32], index: 0, kind: input, shape index: {}]   ;;  %s1781_s1 = inlined_call_operand.vmem [shape: f32[16,32], index: 1, kind: input, shape index: {}]   ;;  %s1782_s2 = inlined_call_operand.vmem [shape: f32[16,32], index: 2, kind: input, shape index: {}]   ;;  %s1783_s3 = inlined_call_operand.vmem [shape: f32[32,64], index: 3, kind: input, shape index: {}]   ;;  %s1784_s4 = inlined_call_operand.vmem [shape: f32[32,32], index: 4, kind: input, shape index: {}]   ;;  %s1785_s5 = inlined_call_operand.vmem [shape: f32[32,32], index: 5, kind: input, shape index: {}]   ;;  %s1786_s6 = inlined_call_operand.vmem [shape: f32[1,32], index: 6, kind: input, shape index: {}]   ;;  %s1787_s7 = inlined_call_operand.vmem [shape: f32[32,32], index: 7, kind: input, shape index: {}]   ;;  %s1788_s8 = inlined_call_operand.vmem [shape: f32[32,32], index: 8, kind: input, shape index: {}]   ;;  %s1789_s9 = inlined_call_operand.vmem [shape: f32[1,32], index: 9, kind: input, shape index: {}]   ;;  %s1790_s10 = inlined_call_operand.vmem [shape: f32[32,32], index: 10, kind: input, shape index: {}]   ;;  %s1791_s11 = inlined_call_operand.vmem [shape: f32[32,32], index: 11, kind: input, shape index: {}]   ;;  %s1792_s12 = inlined_call_operand.vmem [shape: f32[1,32], index: 12, kind: input, shape index: {}]   ;;  %s1793_s13 = inlined_call_operand.hbm [shape: f32[16,32], index: 13, kind: output, shape index: {}]  }
   0x1   :  { %1795 = sst [smem:[#allocation7_spill]] %s1783_s3 }
   0x2   :  { %18 = vsyncpa [#allocation3], 0 }
   0x3   :  { %20 = vsyncpa [#allocation3 + $0x1], 0  ;;  %s1529_s25 = smov 0   ;;  %s1531_s26 = smov 0  }
   0x4   :  { %s1533_s27 = smov 0   ;;  %s1535_s28 = smov 0  }
   0x5 LB: > { %1796 = sst [smem:[#allocation5_spill]] %s1447_s27  ;;  %s1550_s29 = sadd.s32 4294967295, %s1451_s28   ;;  %s1451_s28 = sphi %s1535_s28, %s1805_s28   ;;  %s1447_s27 = sphi %s1533_s27, %s1802_s27   ;;  %s1443_s26 = sphi %s1531_s26, %s1804_s26   ;;  %s1439_s25 = sphi %s1529_s25, %s1803_s25  }
   0x6   : > { %s1164_s30 = sadd.s32 4294967294, %s1451_s28   ;;  %s1554_s14 = sadd.s32 1, %s1451_s28  }
   0x7   : > { %s321_s15 = sadd.s32 1, %s1447_s27  ;;  %s318_s16 = ssub.s32 %s1451_s28, %s1554_s14 }
   0x8   : > { %p331_p0 = scmp.ne.s32.totalorder %s1447_s27, %s1443_s26  ;;  %p319_p1 = scmp.eq.s32.totalorder %s318_s16, 0 }
   0x9   : > { %p332_p2 = scmp.eq.s32.totalorder %s1550_s29, 1  ;;  %p337_p3 = scmp.ne.s32.totalorder %s1443_s26, %s1439_s25 }
   0xa   : > { %p338_p4 = scmp.eq.s32.totalorder %s1164_s30, 1  ;;  %p1167_p7 = scmp.ge.s32.totalorder %s1451_s28, 1 }
   0xb   : > { %s1565_s17 = scalar_select %p319_p1, %s1447_s27, %s321_s15  }
   0xc   : > { %p1567_p5 = por %p332_p2, %p331_p0  ;;  %p1571_p6 = por %p338_p4, %p337_p3 }
   0xd   : > { %1797 = sst [smem:[#allocation6_spill]] %s1565_s17  ;;  %p407_p8 = scmp.lt.s32.totalorder %s1451_s28, 3 }
   0xf   : > { %p408_p9 = pnand %p1167_p7, %p407_p8 }
  0x10   : > { %s1800_s3 = sld [smem:[#allocation7_spill]] (!%p408_p9)  ;;  %v553_v2 = vld [vmem:[%s1784_s4] sm:$0xff] (!%p408_p9)  ;;  %v1453_v3 = vmov (!%p408_p9), 0.0|0.0   ;;  %v554_v5 = vld [vmem:[%s1784_s4 + $0x8] sm:$0xff] (!%p408_p9)  ;;  %p458_p10 = scmp.lt.s32.totalorder (!%p408_p9), %s1550_s29, 1  ;;  %v555_v9 = vld [vmem:[%s1784_s4 + $0x10] sm:$0xff] (!%p408_p9) }
  0x11   : > { %411 = sbr.rel (%p408_p9) target bundleno = 756 (0x2f4), region = 72  ;;  %1299 = vmatprep.subr.bf16.mxu0 (!%p408_p9), %v1453_v3  ;;  %1305 = vmatprep.subr.bf16.mxu1 (!%p408_p9), %v1453_v3  ;;  %v1306_v8 = vpack.c.bf16 (!%p408_p9), %v554_v5, %v553_v2  ;;  %v556_v10 = vld [vmem:[%s1784_s4 + $0x18] sm:$0xff] (!%p408_p9)  ;;  %vm1454_vm0 = vmmov (!%p408_p9), 0   ;;  %v1455_v11 = vmov (!%p408_p9), 0.0   ;;  %v631_v14 = vld [vmem:[%s1785_s5] sm:$0xff] (!%p408_p9)  ;;  %v632_v15 = vld [vmem:[%s1785_s5 + $0x8] sm:$0xff] (!%p408_p9) }
  0x12   : > { %1230 = vmatprep.mubr.msk.f32.mxu0 (!%p408_p9), %vm1454_vm0, %v1455_v11  ;;  %1241 = vmatprep.mubr.msk.f32.mxu1 (!%p408_p9), %vm1454_vm0, %v1455_v11  ;;  %v1309_v13 = vpack.c.bf16 (!%p408_p9), %v556_v10, %v555_v9  ;;  %v718_v16 = vld [vmem:[%s1787_s7] sm:$0xff] (!%p408_p9)  ;;  %v719_v17 = vld [vmem:[%s1787_s7 + $0x8] sm:$0xff] (!%p408_p9)  ;;  %vm479_vm1 = vcmask (!%p408_p9), 261120   ;;  %v1312_v19 = vpack.c.bf16 (!%p408_p9), %v632_v15, %v631_v14  ;;  %v633_v22 = vld [vmem:[%s1785_s5 + $0x10] sm:$0xff] (!%p408_p9)  ;;  %s1456_s27 = smov (!%p408_p9), 32   ;;  %s455_s22 = sand.u32 (!%p408_p9), 1, %s1443_s26  }
  0x13   : > { %1307 = vmatpush3.bf16.msra.mxu1 (!%p408_p9), %v1306_v8  ;;  %v1318_v21 = vpack.c.bf16 (!%p408_p9), %v719_v17, %v718_v16  ;;  %v634_v23 = vld [vmem:[%s1785_s5 + $0x18] sm:$0xff] (!%p408_p9)  ;;  %v720_v24 = vld [vmem:[%s1787_s7 + $0x10] sm:$0xff] (!%p408_p9)  ;;  %v800_v28 = vld [vmem:[%s1788_s8] sm:$0xff] (!%p408_p9)  ;;  %s1168_s23 = sshll.u32 (!%p408_p9), %s455_s22, 3  ;;  %s1184_s24 = sshll.u32 (!%p408_p9), %s1550_s29, 7 }
  0x14   : > { %1308 = vmatprep.subr.bf16.mxu1 (!%p408_p9), %v1453_v3  ;;  %v721_v25 = vld [vmem:[%s1787_s7 + $0x18] sm:$0xff] (!%p408_p9)  ;;  %v1315_v26 = vpack.c.bf16 (!%p408_p9), %v634_v23, %v633_v22  ;;  %v801_v29 = vld [vmem:[%s1788_s8 + $0x8] sm:$0xff] (!%p408_p9)  ;;  %v802_v33 = vld [vmem:[%s1788_s8 + $0x10] sm:$0xff] (!%p408_p9)  ;;  %s457_s30 = scalar_lea.vmem (!%p408_p9), [#allocation2], %s1168_s23 }
  0x15   : > { %v1321_v27 = vpack.c.bf16 (!%p408_p9), %v721_v25, %v720_v24  ;;  %v1324_v31 = vpack.c.bf16 (!%p408_p9), %v801_v29, %v800_v28  ;;  %v803_v34 = vld [vmem:[%s1788_s8 + $0x18] sm:$0xff] (!%p408_p9)  ;;  %v893_v37 = vld [vmem:[%s1790_s10] sm:$0xff] (!%p408_p9)  ;;  %v894_v38 = vld [vmem:[%s1790_s10 + $0x8] sm:$0xff] (!%p408_p9) }
  0x16   : > { %v475_v0 = vld [vmem:[%s1800_s3] sm:$0xff] (!%p408_p9)  ;;  %v476_v1 = vld [vmem:[%s1800_s3 + $0x8] sm:$0xff] (!%p408_p9)  ;;  %v477_v6 = vld [vmem:[%s1800_s3 + $0x10] sm:$0xff] (!%p408_p9)  ;;  %v1327_v35 = vpack.c.bf16 (!%p408_p9), %v803_v34, %v802_v33  ;;  %v1336_v39 = vpack.c.bf16 (!%p408_p9), %v894_v38, %v893_v37 }
  0x17   : > { %v1300_v4 = vpack.c.bf16 (!%p408_p9), %v476_v1, %v475_v0  ;;  %v478_v7 = vld [vmem:[%s1800_s3 + $0x18] sm:$0xff] (!%p408_p9)  ;;  %1310 = vmatpush3.bf16.msra.mxu1 (!%p408_p9), %v1309_v13  ;;  %v895_v40 = vld [vmem:[%s1790_s10 + $0x10] sm:$0xff] (!%p408_p9)  ;;  %v1178_v43 = vld [vmem:[%s1789_s9] ss:$0 sm:$0xff] (!%p408_p9) }
  0x18   : > { %v1303_v12 = vpack.c.bf16 %v478_v7, %v477_v6  ;;  %s459_s15 = scalar_select %p458_p10, %s1550_s29, 1  ;;  %1317 = vmatprep.subr.bf16.mxu1 %v1453_v3  ;;  %v896_v41 = vld [vmem:[%s1790_s10 + $0x18] sm:$0xff]  ;;  %888 = vrot.lane.b32.xlu1 %v1178_v43, %s1456_s27  ;;  %v1175_v50 = vld [vmem:[%s1786_s6] ss:$0 sm:$0xff]  ;;  %v898_v60 = vld [vmem:[%s1791_s11 + $0x8] sm:$0xff] }
  0x19   : > { %1301 = vmatpush3.bf16.msra.mxu0 %v1300_v4  ;;  %v1339_v42 = vpack.c.bf16 %v896_v41, %v895_v40  ;;  %v897_v59 = vld [vmem:[%s1791_s11] sm:$0xff]  ;;  %v899_v61 = vld [vmem:[%s1791_s11 + $0x10] sm:$0xff]  ;;  %v900_v63 = vld [vmem:[%s1791_s11 + $0x18] sm:$0xff]  ;;  %s1458_s29 = smov [#allocation2]  }
  0x1a   : > { %1302 = vmatprep.subr.bf16.mxu0 %v1453_v3  ;;  %s1617_s21 = sshll.u32 %s459_s15, 3  ;;  %v1330_v62 = vpack.c.bf16 %v898_v60, %v897_v59  ;;  %v1333_v0 = vpack.c.bf16 %v900_v63, %v899_v61 }
  0x1b   : > { %s461_s3 = scalar_lea.vmem %s1780_s0, %s1617_s21  ;;  %s465_s17 = scalar_lea.vmem %s1781_s1, %s1617_s21 }
  0x1c   : > { %v470_v18 = vld [vmem:[%s461_s3] sm:$0xff]  ;;  %s469_s3 = scalar_lea.vmem %s1782_s2, %s1617_s21  ;;  %s1737_s21 = scalar_lea.hbm %s1793_s13, %s1184_s24 }
  0x1d   : > { %1304 = vmatpush3.bf16.msra.mxu0 %v1303_v12  ;;  %v1634_v20 = vld [vmem:[%s465_s17] sm:$0xff]  ;;  %s1393_s17 = sshll.u32 %s1458_s29, 4  ;;  %s1394_s17 = int_to_ptr.vmem [resolvable:$false] %s1393_s17 }
  0x1e   : > { %1311 = vmatprep.subr.bf16.mxu0 %v1453_v3  ;;  %1242 = vmatmul.mubr.msk.f32.vlgmr.msra.gmra.mrb[0].mxu1 %vm479_vm1, %v1634_v20  ;;  %v473_v30 = vmul.f32 %v1634_v20, %v470_v18  ;;  %v1669_v32 = vld [vmem:[%s469_s3] sm:$0xff]  ;;  %s1081_s3 = sshll.u32 %s457_s30, 4  ;;  %s1395_s23 = scalar_lea.vmem %s1394_s17, 256  ;;  %s1739_s3 = int_to_ptr.vmem [resolvable:$true] %s1081_s3 }
  0x1f   : > { %1319 = vmatpush3.bf16.msra.mxu1 %v1318_v21  ;;  %1263 = vmatprep.mubr.msk.f32.mxu1 %vm1454_vm0, %v1455_v11  ;;  %v474_v36 = vmul.f32 %v1669_v32, %v470_v18  ;;  %s1389_s15 = scalar_lea.vmem %s1739_s3, 128  ;;  %p1396_p0 = scmp.lt.s32.totalorder %s1739_s3, %s1394_s17 }
  0x20   : > { %1231 = vmatmul.mubr.msk.f32.vlgmr.msra.gmra.mrb[0].mxu0 %vm479_vm1, %v470_v18  ;;  %1320 = vmatprep.subr.bf16.mxu1 %v1453_v3  ;;  %p1390_p11 = scmp.ne.s32.totalorder %s1739_s3, %s1389_s15  ;;  %p1397_p1 = scmp.lt.s32.totalorder %s1395_s23, %s1389_s15 }
  0x21   : > { %1313 = vmatpush3.bf16.msra.mxu0 %v1312_v19  ;;  %1252 = vmatprep.mubr.msk.f32.mxu0 %vm1454_vm0, %v1455_v11  ;;  %v1063_v19 = vsub.f32 %v1634_v20, %v1669_v32 }
  0x22   : > { %1314 = vmatprep.subr.bf16.mxu0 %v1453_v3  ;;  %p1391_p12 = pnand %p1390_p11, %p1567_p5  ;;  %p1398_p2 = por %p1397_p1, %p1396_p0 }
  0x23   : > { %1322 = vmatpush3.bf16.msra.mxu1 %v1321_v27 }
  0x24   : > { %1329 = vmatprep.subr.bf16.mxu1 %v1453_v3  ;;  %p1392_p13 = pneg %p1391_p12 }
  0x25   : > { %1316 = vmatpush3.bf16.msra.mxu0 %v1315_v26 }
  0x26   : > { %1323 = vmatprep.subr.bf16.mxu0 %v1453_v3  ;;  %1264 = vmatmul.mubr.msk.f32.vlgmr.msra.gmra.mrb[2].mxu1 %vm479_vm1, %v1669_v32  ;;  %p1399_p3 = pnand %p1398_p2, %p1392_p13 }
  0x27   : > { %1285 = vmatprep.mubr.msk.f32.mxu1 %vm1454_vm0, %v1455_v11  ;;  %1331 = vmatpush3.bf16.msra.mxu1 %v1330_v62 }
  0x28   : > { %1253 = vmatmul.mubr.msk.f32.vlgmr.msra.gmra.mrb[2].mxu0 %vm479_vm1, %v473_v30  ;;  %1332 = vmatprep.subr.bf16.mxu1 %v1453_v3 }
  0x29   : > { %1325 = vmatpush3.bf16.msra.mxu0 %v1324_v31  ;;  %1274 = vmatprep.mubr.msk.f32.mxu0 %vm1454_vm0, %v1455_v11 }
  0x2a   : > { %1326 = vmatprep.subr.bf16.mxu0 %v1453_v3 }
  0x2b   : > { %1334 = vmatpush3.bf16.msra.mxu1 %v1333_v0 }
  0x2d   : > { %1328 = vmatpush3.bf16.msra.mxu0 %v1327_v35 }
  0x2e   : > { %1335 = vmatprep.subr.bf16.mxu0 %v1453_v3 }
  0x30   : > { %1275 = vmatmul.mubr.msk.f32.vlgmr.msra.gmra.mrb[4].mxu0 %vm479_vm1, %v474_v36 }
  0x31   : > { %1296 = vmatprep.mubr.msk.f32.mxu0 %vm1454_vm0, %v1455_v11  ;;  %1337 = vmatpush3.bf16.msra.mxu0 %v1336_v39 }
  0x32   : > { %1338 = vmatprep.subr.bf16.mxu0 %v1453_v3  ;;  %v1181_v3 = vld [vmem:[%s1792_s12] ss:$0 sm:$0xff] }
  0x35   : > { %1340 = vmatpush3.bf16.msra.mxu0 %v1339_v42 }
  0x8a   : > { %v889_v5 = vpop.permute.xlu1 %888 }
  0xf1   : > { %v626_v46 = vpop.f32.mrb[0].mxu1 }
  0xf2   : > { %v1243_v48 = vpop.f32.mrb[1].mxu1 }
  0xf3   : > { %v549_v44 = vpop.f32.mrb[0].mxu0 }
  0xf4   : > { %v1232_v45 = vpop.f32.mrb[1].mxu0  ;;  %v630_v47 = vadd.f32 %v626_v46, %v549_v44 }
  0xf9   : > { %v791_v52 = vpop.f32.mrb[2].mxu1 }
  0xfa   : > { %796 = vrot.lane.b32.xlu0 %v791_v52, %s1456_s27  ;;  %v1265_v54 = vpop.f32.mrb[3].mxu1 }
  0xfb   : > { %v704_v49 = vpop.f32.mrb[2].mxu0 }
  0xfc   : > { %v708_v51 = vadd.f32 %v704_v49, %v630_v47  ;;  %v1254_v53 = vpop.f32.mrb[3].mxu0 }
  0xfe   : > { %v716_v55 = vadd.f32 %v1175_v50, %v708_v51 }
 0x100   : > { %v717_v56 = vmax.f32 %v716_v55, 0.0 }
 0x102   : > { %1297 = vmatmul.mubr.msk.f32.vlgmr.msra.gmra.mrb[6].mxu0 %vm479_vm1, %v717_v56 }
 0x103   : > { %v873_v57 = vpop.f32.mrb[4].mxu0 }
 0x104   : > { %878 = vrot.lane.b32.xlu0 %v873_v57, %s1456_s27  ;;  %v1276_v58 = vpop.f32.mrb[5].mxu0  ;;  %s1457_s27 = smov 96  }
 0x16c   : > { %v797_v1 = vpop.permute.xlu0 %796 }
 0x16d   : > { %v799_v2 = vadd.f32 %v797_v1, %v549_v44 }
 0x176   : > { %v879_v4 = vpop.permute.xlu0 %878 }
 0x177   : > { %v881_v6 = vadd.f32 %v879_v4, %v799_v2 }
 0x179   : > { %v891_v7 = vadd.f32 %v889_v5, %v881_v6 }
 0x17b   : > { %v892_v8 = vmax.f32 %v891_v7, 0.0 }
 0x17d   : > { %902 = vrot.lane.b32.xlu1 %v892_v8, %s1457_s27  ;;  %s1068_s27 = scalar_lea.sflag [#allocation3], %s455_s22 }
 0x1d5   : > { %v1045_v9 = vpop.f32.mrb[6].mxu0 }
 0x1d6   : > { %v1298_v10 = vpop.f32.mrb[7].mxu0 }
 0x1ef   : > { %v903_v11 = vpop.permute.xlu1 %902 }
 0x1f0   : > { %1286 = vmatmul.mubr.msk.f32.vlgmr.msra.gmra.mrb[4].mxu1 %vm479_vm1, %v903_v11 }
 0x2c3   : > { %v972_v12 = vpop.f32.mrb[4].mxu1 }
 0x2c4   : > { %v1046_v13 = vadd.f32 %v1045_v9, %v972_v12  ;;  %v1287_v14 = vpop.f32.mrb[5].mxu1 }
 0x2c6   : > { %v1056_v15 = vadd.f32 %v1181_v3, %v1046_v13 }
 0x2c8   : > { %v1182_v16 = vmul.f32 -1.442695, %v1056_v15 }
 0x2ca   : > { %1385 = vpow2.f32 %v1182_v16 }
 0x2d4   : > { %v1386_v17 = vpop.eup %1385 }
 0x2d5   : > { %v1060_v18 = vadd.f32 1.0, %v1386_v17 }
 0x2d7   : > { %1387 = vrcp.f32 %v1060_v18 }
 0x2e1   : > { %v1388_v21 = vpop.eup %1387 }
 0x2e2   : > { %v1064_v22 = vmul.f32 %v1388_v21, %v1063_v19 }
 0x2e4   : > { %v1065_v23 = vadd.f32 %v1064_v22, %v1669_v32 }
 0x2e6   : > { %1066 = vst.msk [vmem:[%s457_s30] sm:$0xff] %vm479_vm1, %v1065_v23 }
 0x2e7   : > { %1402 = shalt.err (!%p1399_p3)
}
 0x2e8   : > { %s1403_s22 = scalar_lea.hbm %s1737_s21, 128  ;;  %s1407_s16 = scalar_lea.hbm %s1793_s13, 256 }
 0x2e9   : > { %p1404_p4 = scmp.ne.s32.totalorder %s1737_s21, %s1403_s22  ;;  %p1408_p9 = scmp.lt.u32.totalorder %s1737_s21, %s1793_s13 }
 0x2ea   : > { %p1409_p10 = scmp.lt.u32.totalorder %s1407_s16, %s1403_s22  ;;  %p1411_p12 = scmp.lt.u32.totalorder %s1403_s22, %s1737_s21 }
 0x2eb   : > { %p1405_p7 = pnand %p1404_p4, %p1567_p5 }
 0x2ec   : > { %p1410_p11 = por %p1409_p10, %p1408_p9 }
 0x2ed   : > { %p1406_p8 = pneg %p1405_p7 }
 0x2ee   : > { %p1412_p13 = por %p1411_p12, %p1410_p11 }
 0x2f0   : > { %p1413_p0 = pnand %p1412_p13, %p1406_p8 }
 0x2f2   : > { %1416 = shalt.err (!%p1413_p0)
}
 0x2f3   : > { %1341 = dma.vmem_to_hbm [thread:$0]  (%p1567_p5), %s1739_s3, 128, %s1737_s21, %s1068_s27  }
 0x2f4 PF: > { %p1347_p1 = scmp.ge.s32.totalorder %s1451_s28, 2  ;;  %s1093_s15 = sand.u32 1, %s1439_s25  }
 0x2f5   : > { %s1094_s17 = scalar_lea.sflag [#allocation3], %s1093_s15 }
 0x2f6   : > { %p1344_p2 = pnand %p1347_p1, %p1571_p6 }
 0x2f8   : > { %1434 = dma.done.wait (!%p1344_p2), %s1094_s17, 128  }
 0x2f9   : > { %1436 = vsyncadd (!%p1344_p2), %s1094_s17, 4294967168  ;;  %s1801_s23 = sld [smem:[#allocation5_spill]]  ;;  %s1802_s27 = sld [smem:[#allocation6_spill]] }
 0x2fa   : > { %p23_p3 = scmp.ge.s32.totalorder %s1554_s14, 4   ;;  %s1803_s25 = smov %s1443_s26 }
 0x2fb   : > { %s1805_s28 = smov %s1554_s14 }
 0x2fc   :  { %25 = sbr.rel (!%p23_p3) target bundleno = 5 (0x5), region = 113 }
 0x2ff   : > { %s1804_s26 = smov %s1801_s23 }
 0x303   :  { %1099 = vsyncpa [#allocation3], 1 }
 0x304   :  { %1101 = vsyncpa [#allocation3 + $0x1], 1 }

</bundles_post_ra>
